<compile_context>
chip_gen: v6e
topology: v6e:2x2x1
jax: 0.10.0
libtpu: 0.0.40
codegen_flags: <defaults>
</compile_context>

<pallas_src>
import functools

import jax
import jax.numpy as jnp
from jax.experimental import pallas as pl
from jax.experimental.pallas import tpu as pltpu


def _round_up(x, m):
    return ((x + m - 1) // m) * m


def _gpsde_kernel(slab_ref, C_ref, Q_ref, dcol_ref, Wcol_ref, ccol_ref, out_ref,
                  *, L, D, off_m, off_S, off_A, off_b, off_y, off_dt, sigma2):
    f32 = jnp.float32
    LL = L * L
    TN = slab_ref.shape[-1]

    # Lane-dense loads: sublanes = features, lanes = flattened (trial, time) rows.
    m2 = slab_ref[off_m:off_m + L, :]          # (L,  TN)  means
    Sf = slab_ref[off_S:off_S + LL, :]         # (LL, TN)  row f = i*L+j  <->  S[i, j]
    Af = slab_ref[off_A:off_A + LL, :]         # (LL, TN)  row f = i*L+j  <->  A[i, j]
    b2 = slab_ref[off_b:off_b + L, :]          # (L,  TN)
    y2 = slab_ref[off_y:off_y + D, :]          # (D,  TN)  binned counts
    dtm = slab_ref[off_dt:off_dt + 1, :]       # (1,  TN)  dt * row-validity mask

    C = C_ref[...]                              # (D, L)
    Q = Q_ref[...]                              # (D, LL)  Q[d, i*L+j] = C[d,i]*C[d,j]
    dcol = dcol_ref[...]                        # (D, 1)
    Wcol = Wcol_ref[...]                        # (LL, 1)  vec(W), row-major
    ccol = ccol_ref[...]                        # (L, 1)

    # ---- outputMapping + like: 2-D MXU matmuls with the big row axis on lanes ----
    mu = jnp.dot(C, m2, preferred_element_type=f32) + dcol      # (D, TN)
    cov = jnp.dot(Q, Sf, preferred_element_type=f32)            # (D, TN) = diag(C S C^T)
    ell_val = jnp.sum(y2 * mu - dtm * jnp.exp(mu + 0.5 * cov))

    # ---- KLdiv: per-row quadratic + trace, unrolled multiply-adds on the VPU ----
    Mf = Af + Wcol                                              # (LL, TN)   M = W + A
    cb = ccol - b2                                              # (L,  TN)   c - b

    def mrow(i, j):                                             # (1, TN) row of M[i, j]
        r = i * L + j
        return Mf[r:r + 1, :]

    # quad = || M m + (c - b) ||^2  per row
    quad = jnp.zeros((1, TN), f32)
    for i in range(L):
        acc = cb[i:i + 1, :]
        for j in range(L):
            acc = acc + mrow(i, j) * m2[j:j + 1, :]
        quad = quad + acc * acc

    # tr(M S M^T) = sum_{j,k} S[j,k] * (M^T M)[j,k]   (Gram form, S reloaded lazily)
    tr = jnp.zeros((1, TN), f32)
    for j in range(L):
        for k in range(j, L):
            g = mrow(0, j) * mrow(0, k)
            for i in range(1, L):
                g = g + mrow(i, j) * mrow(i, k)
            s_jk = slab_ref[off_S + j * L + k:off_S + j * L + k + 1, :]
            if j != k:
                s_jk = s_jk + slab_ref[off_S + k * L + j:off_S + k * L + j + 1, :]
            tr = tr + g * s_jk

    kld_val = (0.5 / sigma2) * jnp.sum(dtm * (quad + tr))

    # Merged lane-dense partial block: ell in sublane 0, kld in sublane 1.
    rows = jax.lax.broadcasted_iota(jnp.int32, (8, 128), 0)
    blk = jnp.where(rows == 0, ell_val, 0.0) + jnp.where(rows == 1, kld_val, 0.0)
    out_ref[...] = blk[None, :, :].astype(out_ref.dtype)


def dense_gpsde_forward(m, S, A, b, y, C, d, W, c, *, dt=0.1, sigma2=1.0, row_block=2048):
    """Returns (ell.sum(), kld.sum(), prior_trans, prior_map) like DenseGPSDEmodel.forward."""
    f32 = jnp.float32
    R, T, L = m.shape
    D = y.shape[-1]
    LL = L * L
    N = R * T

    # Feature segments, each padded to a multiple of 8 sublanes (tile-aligned ref slices).
    L_pad = _round_up(L, 8)
    LL_pad = _round_up(LL, 8)
    D_pad = _round_up(D, 8)
    off_m = 0
    off_S = off_m + L_pad
    off_A = off_S + LL_pad
    off_b = off_A + LL_pad
    off_y = off_b + L_pad
    off_dt = off_y + D_pad
    F = off_dt + 8

    # Row (lane) tiling: TN a multiple of 128 lanes.
    TN = max(128, _round_up(min(int(row_block), _round_up(N, 128)), 128))
    N_pad = _round_up(N, TN)
    G = N_pad // TN

    def seg(x2, rows):
        # x2: (k, N) feature rows -> zero-pad features to `rows`, lanes to N_pad.
        return jnp.pad(x2.astype(f32), ((0, rows - x2.shape[0]), (0, N_pad - N)))

    mT = m.reshape(N, L).T                       # (L,  N)
    ST = S.reshape(N, LL).T                      # (LL, N)  row-major vec(S)
    AT = A.reshape(N, LL).T                      # (LL, N)  row-major vec(A)
    bT = b.reshape(N, L).T                       # (L,  N)
    yT = y.reshape(N, D).T                       # (D,  N)
    dt_row = jnp.full((1, N), dt, f32)           # dt on real rows, 0 on padded rows

    slab = jnp.concatenate([
        seg(mT, L_pad), seg(ST, LL_pad), seg(AT, LL_pad),
        seg(bT, L_pad), seg(yT, D_pad), seg(dt_row, 8),
    ], axis=0)                                   # (F, N_pad), lane-dense

    # Trial-invariant parameters (grid-invariant blocks).
    Cf = jnp.asarray(C, f32)                                      # (D, L)
    Qf = (Cf[:, :, None] * Cf[:, None, :]).reshape(D, LL)         # (D, LL) row-wise Kron
    dcol = jnp.asarray(d, f32).reshape(D, 1)
    Wcol = jnp.asarray(W, f32).reshape(LL, 1)
    ccol = jnp.asarray(c, f32).reshape(L, 1)

    kernel = functools.partial(
        _gpsde_kernel, L=L, D=D, off_m=off_m, off_S=off_S, off_A=off_A,
        off_b=off_b, off_y=off_y, off_dt=off_dt, sigma2=float(sigma2))

    # VMEM limit from the actual double-buffered footprint (+ headroom); fits v7x 64 MiB.
    slab_block_bytes = F * TN * 4
    vmem_limit = int(min(64 * 1024 * 1024,
                         max(8 * 1024 * 1024, 4 * slab_block_bytes + 2 * 1024 * 1024)))

    grid_spec = pltpu.PrefetchScalarGridSpec(
        num_scalar_prefetch=0,
        grid=(G,),
        in_specs=[
            pl.BlockSpec((F, TN), lambda i: (0, i)),      # feature slab (single DMA/step)
            pl.BlockSpec((D, L), lambda i: (0, 0)),       # C
            pl.BlockSpec((D, LL), lambda i: (0, 0)),      # Q (Kronecker of C)
            pl.BlockSpec((D, 1), lambda i: (0, 0)),       # d
            pl.BlockSpec((LL, 1), lambda i: (0, 0)),      # vec(W)
            pl.BlockSpec((L, 1), lambda i: (0, 0)),       # c
        ],
        out_specs=pl.BlockSpec((1, 8, 128), lambda i: (i, 0, 0)),  # merged partials
    )

    part = pl.pallas_call(
        kernel,
        grid_spec=grid_spec,
        out_shape=jax.ShapeDtypeStruct((G, 8, 128), f32),
        compiler_params=pltpu.CompilerParams(
            dimension_semantics=("parallel",),            # megacore sharding on v7x
            vmem_limit_bytes=vmem_limit,
        ),
    )(slab, Cf, Qf, dcol, Wcol, ccol)

    ell_sum = jnp.sum(part[:, 0, 0])
    kld_sum = jnp.sum(part[:, 1, 0])

    # log_prior_distribution(): standard-normal priors on parameters (glue, plain JAX).
    prior_trans = -0.5 * (jnp.sum(jnp.asarray(W, f32) ** 2) + jnp.sum(jnp.asarray(c, f32) ** 2))
    prior_map = -0.5 * (jnp.sum(jnp.asarray(C, f32) ** 2) + jnp.sum(jnp.asarray(d, f32) ** 2))
    return ell_sum, kld_sum, prior_trans, prior_map


if __name__ == "__main__":
    R, T, L, D = 3, 100, 4, 4     # nTrials, grid length, nLatent, output dim
    dt, sigma2 = 0.1, 1.0

    key = jax.random.PRNGKey(0)
    ks = jax.random.split(key, 9)
    m = jax.random.normal(ks[0], (R, T, L), jnp.float32)
    V = 0.3 * jax.random.normal(ks[1], (R, T, L, L), jnp.float32)
    eye = jnp.eye(L, dtype=jnp.float32)
    S = 0.5 * eye[None, None] + jnp.einsum('rtij,rtkj->rtik', V, V)   # SPD marginal covs
    A = 0.2 * jax.random.normal(ks[2], (R, T, L, L), jnp.float32)
    b = jax.random.normal(ks[3], (R, T, L), jnp.float32)
    y = jax.random.poisson(ks[4], 2.0, (R, T, D)).astype(jnp.float32)
    C = 0.5 * jax.random.normal(ks[5], (D, L), jnp.float32)
    d = 0.1 * jax.random.normal(ks[6], (D,), jnp.float32)
    W = 0.3 * jax.random.normal(ks[7], (L, L), jnp.float32)
    c = 0.1 * jax.random.normal(ks[8], (L,), jnp.float32)

    # row_block=128 -> N=300 rows pad to 384 -> 3 grid steps (exercises pipeline + padding mask)
    ell_sum, kld_sum, prior_trans, prior_map = jax.block_until_ready(
        dense_gpsde_forward(m, S, A, b, y, C, d, W, c, dt=dt, sigma2=sigma2, row_block=128))

    # pure-JAX reference of the same math
    mu_r = jnp.einsum('rtl,dl->rtd', m, C) + d
    cov_r = jnp.einsum('dl,rtlk,dk->rtd', C, S, C)
    ell_r = jnp.sum(y * mu_r - dt * jnp.exp(mu_r + 0.5 * cov_r))
    M_r = W[None, None] + A
    Mm_r = jnp.einsum('rtij,rtj->rti', M_r, m) + (c[None, None] - b)
    quad_r = jnp.sum(Mm_r * Mm_r)
    trc_r = jnp.einsum('rtij,rtjk,rtik->', M_r, S, M_r)
    kld_r = 0.5 * dt / sigma2 * (quad_r + trc_r)

    assert jnp.allclose(ell_sum, ell_r, rtol=1e-3, atol=1e-2), (ell_sum, ell_r)
    assert jnp.allclose(kld_sum, kld_r, rtol=1e-3, atol=1e-2), (kld_sum, kld_r)
    assert jnp.isfinite(prior_trans) and jnp.isfinite(prior_map)

    print("KERNEL_OK")
</pallas_src>

<mosaic_0001>
module attributes {stable_mosaic.version = 11 : i64} {
  func.func @_gpsde_kernel(%arg0: i32, %arg1: memref<64x128xf32, #tpu.memory_space<vmem>>, %arg2: memref<4x4xf32, #tpu.memory_space<vmem>>, %arg3: memref<4x16xf32, #tpu.memory_space<vmem>>, %arg4: memref<4x1xf32, #tpu.memory_space<vmem>>, %arg5: memref<16x1xf32, #tpu.memory_space<vmem>>, %arg6: memref<4x1xf32, #tpu.memory_space<vmem>>, %arg7: memref<1x8x128xf32, #tpu.memory_space<vmem>>) attributes {dimension_semantics = [#tpu.dimension_semantics<parallel>], iteration_bounds = array<i64: 3>, scalar_prefetch = 0 : i64, scratch_operands = 0 : i64, tpu.core_type = #tpu.core_type<tc>, window_params = [{transform_indices = @transform_0, window_bounds = array<i64: 64, 128>}, {pipeline_mode = #tpu.pipeline_mode<synchronous>, transform_indices = @transform_1, window_bounds = array<i64: 4, 4>}, {pipeline_mode = #tpu.pipeline_mode<synchronous>, transform_indices = @transform_2, window_bounds = array<i64: 4, 16>}, {pipeline_mode = #tpu.pipeline_mode<synchronous>, transform_indices = @transform_3, window_bounds = array<i64: 4, 1>}, {pipeline_mode = #tpu.pipeline_mode<synchronous>, transform_indices = @transform_4, window_bounds = array<i64: 16, 1>}, {pipeline_mode = #tpu.pipeline_mode<synchronous>, transform_indices = @transform_5, window_bounds = array<i64: 4, 1>}, {transform_indices = @transform_6, window_bounds = array<i64: 1, 8, 128>}]} {
    %c0 = arith.constant 0 : index
    %c0_0 = arith.constant 0 : index
    %0 = vector.load %arg1[%c0, %c0_0] : memref<64x128xf32, #tpu.memory_space<vmem>>, vector<4x128xf32>
    %c8 = arith.constant 8 : index
    %c0_1 = arith.constant 0 : index
    %1 = vector.load %arg1[%c8, %c0_1] : memref<64x128xf32, #tpu.memory_space<vmem>>, vector<16x128xf32>
    %c24 = arith.constant 24 : index
    %c0_2 = arith.constant 0 : index
    %2 = vector.load %arg1[%c24, %c0_2] : memref<64x128xf32, #tpu.memory_space<vmem>>, vector<16x128xf32>
    %c40 = arith.constant 40 : index
    %c0_3 = arith.constant 0 : index
    %3 = vector.load %arg1[%c40, %c0_3] : memref<64x128xf32, #tpu.memory_space<vmem>>, vector<4x128xf32>
    %c48 = arith.constant 48 : index
    %c0_4 = arith.constant 0 : index
    %4 = vector.load %arg1[%c48, %c0_4] : memref<64x128xf32, #tpu.memory_space<vmem>>, vector<4x128xf32>
    %c56 = arith.constant 56 : index
    %c0_5 = arith.constant 0 : index
    %5 = vector.load %arg1[%c56, %c0_5] : memref<64x128xf32, #tpu.memory_space<vmem>>, vector<1x128xf32>
    %c0_6 = arith.constant 0 : index
    %c0_7 = arith.constant 0 : index
    %6 = vector.load %arg2[%c0_6, %c0_7] : memref<4x4xf32, #tpu.memory_space<vmem>>, vector<4x4xf32>
    %c0_8 = arith.constant 0 : index
    %c0_9 = arith.constant 0 : index
    %7 = vector.load %arg3[%c0_8, %c0_9] : memref<4x16xf32, #tpu.memory_space<vmem>>, vector<4x16xf32>
    %c0_10 = arith.constant 0 : index
    %c0_11 = arith.constant 0 : index
    %8 = vector.load %arg4[%c0_10, %c0_11] : memref<4x1xf32, #tpu.memory_space<vmem>>, vector<4x1xf32>
    %c0_12 = arith.constant 0 : index
    %c0_13 = arith.constant 0 : index
    %9 = vector.load %arg5[%c0_12, %c0_13] : memref<16x1xf32, #tpu.memory_space<vmem>>, vector<16x1xf32>
    %c0_14 = arith.constant 0 : index
    %c0_15 = arith.constant 0 : index
    %10 = vector.load %arg6[%c0_14, %c0_15] : memref<4x1xf32, #tpu.memory_space<vmem>>, vector<4x1xf32>
    %cst = arith.constant dense<0.000000e+00> : vector<4x128xf32>
    %11 = tpu.matmul %6, %0, %cst {dimension_numbers = #tpu.dot_dimension_numbers<[1], [0], [0], [1], [0, 0, 1, 1], [], []>} : vector<4x4xf32>, vector<4x128xf32>, vector<4x128xf32> -> vector<4x128xf32>
    %12 = vector.broadcast %8 : vector<4x1xf32> to vector<4x128xf32>
    %13 = arith.addf %11, %12 : vector<4x128xf32>
    %cst_16 = arith.constant dense<0.000000e+00> : vector<4x128xf32>
    %14 = tpu.matmul %7, %1, %cst_16 {dimension_numbers = #tpu.dot_dimension_numbers<[1], [0], [0], [1], [0, 0, 1, 1], [], []>} : vector<4x16xf32>, vector<16x128xf32>, vector<4x128xf32> -> vector<4x128xf32>
    %15 = arith.mulf %4, %13 : vector<4x128xf32>
    %cst_17 = arith.constant 5.000000e-01 : f32
    %16 = vector.broadcast %cst_17 : f32 to vector<4x128xf32>
    %17 = arith.mulf %16, %14 : vector<4x128xf32>
    %18 = arith.addf %13, %17 : vector<4x128xf32>
    %19 = math.exp %18 : vector<4x128xf32>
    %20 = vector.broadcast %5 : vector<1x128xf32> to vector<4x128xf32>
    %21 = arith.mulf %20, %19 : vector<4x128xf32>
    %22 = arith.subf %15, %21 : vector<4x128xf32>
    %23 = vector.shape_cast %22 : vector<4x128xf32> to vector<1x4x128xf32>
    %cst_18 = arith.constant dense<0.000000e+00> : vector<1xf32>
    %24 = vector.multi_reduction <add>, %23, %cst_18 [1, 2] : vector<1x4x128xf32> to vector<1xf32>
    %25 = vector.shape_cast %24 : vector<1xf32> to vector<1x1x1xf32>
    %26 = vector.extract %25[0, 0, 0] : f32 from vector<1x1x1xf32>
    %27 = vector.broadcast %9 : vector<16x1xf32> to vector<16x128xf32>
    %28 = arith.addf %2, %27 : vector<16x128xf32>
    %29 = vector.broadcast %10 : vector<4x1xf32> to vector<4x128xf32>
    %30 = arith.subf %29, %3 : vector<4x128xf32>
    %cst_19 = arith.constant 0.000000e+00 : f32
    %31 = vector.broadcast %cst_19 : f32 to vector<1x128xf32>
    %32 = vector.extract_strided_slice %30 {offsets = [0, 0], sizes = [1, 128], strides = [1, 1]} : vector<4x128xf32> to vector<1x128xf32>
    %33 = vector.extract_strided_slice %28 {offsets = [0, 0], sizes = [1, 128], strides = [1, 1]} : vector<16x128xf32> to vector<1x128xf32>
    %34 = vector.extract_strided_slice %0 {offsets = [0, 0], sizes = [1, 128], strides = [1, 1]} : vector<4x128xf32> to vector<1x128xf32>
    %35 = arith.mulf %33, %34 : vector<1x128xf32>
    %36 = arith.addf %32, %35 : vector<1x128xf32>
    %37 = vector.extract_strided_slice %28 {offsets = [1, 0], sizes = [1, 128], strides = [1, 1]} : vector<16x128xf32> to vector<1x128xf32>
    %38 = vector.extract_strided_slice %0 {offsets = [1, 0], sizes = [1, 128], strides = [1, 1]} : vector<4x128xf32> to vector<1x128xf32>
    %39 = arith.mulf %37, %38 : vector<1x128xf32>
    %40 = arith.addf %36, %39 : vector<1x128xf32>
    %41 = vector.extract_strided_slice %28 {offsets = [2, 0], sizes = [1, 128], strides = [1, 1]} : vector<16x128xf32> to vector<1x128xf32>
    %42 = vector.extract_strided_slice %0 {offsets = [2, 0], sizes = [1, 128], strides = [1, 1]} : vector<4x128xf32> to vector<1x128xf32>
    %43 = arith.mulf %41, %42 : vector<1x128xf32>
    %44 = arith.addf %40, %43 : vector<1x128xf32>
    %45 = vector.extract_strided_slice %28 {offsets = [3, 0], sizes = [1, 128], strides = [1, 1]} : vector<16x128xf32> to vector<1x128xf32>
    %46 = vector.extract_strided_slice %0 {offsets = [3, 0], sizes = [1, 128], strides = [1, 1]} : vector<4x128xf32> to vector<1x128xf32>
    %47 = arith.mulf %45, %46 : vector<1x128xf32>
    %48 = arith.addf %44, %47 : vector<1x128xf32>
    %49 = arith.mulf %48, %48 : vector<1x128xf32>
    %50 = arith.addf %31, %49 : vector<1x128xf32>
    %51 = vector.extract_strided_slice %30 {offsets = [1, 0], sizes = [1, 128], strides = [1, 1]} : vector<4x128xf32> to vector<1x128xf32>
    %52 = vector.extract_strided_slice %28 {offsets = [4, 0], sizes = [1, 128], strides = [1, 1]} : vector<16x128xf32> to vector<1x128xf32>
    %53 = vector.extract_strided_slice %0 {offsets = [0, 0], sizes = [1, 128], strides = [1, 1]} : vector<4x128xf32> to vector<1x128xf32>
    %54 = arith.mulf %52, %53 : vector<1x128xf32>
    %55 = arith.addf %51, %54 : vector<1x128xf32>
    %56 = vector.extract_strided_slice %28 {offsets = [5, 0], sizes = [1, 128], strides = [1, 1]} : vector<16x128xf32> to vector<1x128xf32>
    %57 = vector.extract_strided_slice %0 {offsets = [1, 0], sizes = [1, 128], strides = [1, 1]} : vector<4x128xf32> to vector<1x128xf32>
    %58 = arith.mulf %56, %57 : vector<1x128xf32>
    %59 = arith.addf %55, %58 : vector<1x128xf32>
    %60 = vector.extract_strided_slice %28 {offsets = [6, 0], sizes = [1, 128], strides = [1, 1]} : vector<16x128xf32> to vector<1x128xf32>
    %61 = vector.extract_strided_slice %0 {offsets = [2, 0], sizes = [1, 128], strides = [1, 1]} : vector<4x128xf32> to vector<1x128xf32>
    %62 = arith.mulf %60, %61 : vector<1x128xf32>
    %63 = arith.addf %59, %62 : vector<1x128xf32>
    %64 = vector.extract_strided_slice %28 {offsets = [7, 0], sizes = [1, 128], strides = [1, 1]} : vector<16x128xf32> to vector<1x128xf32>
    %65 = vector.extract_strided_slice %0 {offsets = [3, 0], sizes = [1, 128], strides = [1, 1]} : vector<4x128xf32> to vector<1x128xf32>
    %66 = arith.mulf %64, %65 : vector<1x128xf32>
    %67 = arith.addf %63, %66 : vector<1x128xf32>
    %68 = arith.mulf %67, %67 : vector<1x128xf32>
    %69 = arith.addf %50, %68 : vector<1x128xf32>
    %70 = vector.extract_strided_slice %30 {offsets = [2, 0], sizes = [1, 128], strides = [1, 1]} : vector<4x128xf32> to vector<1x128xf32>
    %71 = vector.extract_strided_slice %28 {offsets = [8, 0], sizes = [1, 128], strides = [1, 1]} : vector<16x128xf32> to vector<1x128xf32>
    %72 = vector.extract_strided_slice %0 {offsets = [0, 0], sizes = [1, 128], strides = [1, 1]} : vector<4x128xf32> to vector<1x128xf32>
    %73 = arith.mulf %71, %72 : vector<1x128xf32>
    %74 = arith.addf %70, %73 : vector<1x128xf32>
    %75 = vector.extract_strided_slice %28 {offsets = [9, 0], sizes = [1, 128], strides = [1, 1]} : vector<16x128xf32> to vector<1x128xf32>
    %76 = vector.extract_strided_slice %0 {offsets = [1, 0], sizes = [1, 128], strides = [1, 1]} : vector<4x128xf32> to vector<1x128xf32>
    %77 = arith.mulf %75, %76 : vector<1x128xf32>
    %78 = arith.addf %74, %77 : vector<1x128xf32>
    %79 = vector.extract_strided_slice %28 {offsets = [10, 0], sizes = [1, 128], strides = [1, 1]} : vector<16x128xf32> to vector<1x128xf32>
    %80 = vector.extract_strided_slice %0 {offsets = [2, 0], sizes = [1, 128], strides = [1, 1]} : vector<4x128xf32> to vector<1x128xf32>
    %81 = arith.mulf %79, %80 : vector<1x128xf32>
    %82 = arith.addf %78, %81 : vector<1x128xf32>
    %83 = vector.extract_strided_slice %28 {offsets = [11, 0], sizes = [1, 128], strides = [1, 1]} : vector<16x128xf32> to vector<1x128xf32>
    %84 = vector.extract_strided_slice %0 {offsets = [3, 0], sizes = [1, 128], strides = [1, 1]} : vector<4x128xf32> to vector<1x128xf32>
    %85 = arith.mulf %83, %84 : vector<1x128xf32>
    %86 = arith.addf %82, %85 : vector<1x128xf32>
    %87 = arith.mulf %86, %86 : vector<1x128xf32>
    %88 = arith.addf %69, %87 : vector<1x128xf32>
    %89 = vector.extract_strided_slice %30 {offsets = [3, 0], sizes = [1, 128], strides = [1, 1]} : vector<4x128xf32> to vector<1x128xf32>
    %90 = vector.extract_strided_slice %28 {offsets = [12, 0], sizes = [1, 128], strides = [1, 1]} : vector<16x128xf32> to vector<1x128xf32>
    %91 = vector.extract_strided_slice %0 {offsets = [0, 0], sizes = [1, 128], strides = [1, 1]} : vector<4x128xf32> to vector<1x128xf32>
    %92 = arith.mulf %90, %91 : vector<1x128xf32>
    %93 = arith.addf %89, %92 : vector<1x128xf32>
    %94 = vector.extract_strided_slice %28 {offsets = [13, 0], sizes = [1, 128], strides = [1, 1]} : vector<16x128xf32> to vector<1x128xf32>
    %95 = vector.extract_strided_slice %0 {offsets = [1, 0], sizes = [1, 128], strides = [1, 1]} : vector<4x128xf32> to vector<1x128xf32>
    %96 = arith.mulf %94, %95 : vector<1x128xf32>
    %97 = arith.addf %93, %96 : vector<1x128xf32>
    %98 = vector.extract_strided_slice %28 {offsets = [14, 0], sizes = [1, 128], strides = [1, 1]} : vector<16x128xf32> to vector<1x128xf32>
    %99 = vector.extract_strided_slice %0 {offsets = [2, 0], sizes = [1, 128], strides = [1, 1]} : vector<4x128xf32> to vector<1x128xf32>
    %100 = arith.mulf %98, %99 : vector<1x128xf32>
    %101 = arith.addf %97, %100 : vector<1x128xf32>
    %102 = vector.extract_strided_slice %28 {offsets = [15, 0], sizes = [1, 128], strides = [1, 1]} : vector<16x128xf32> to vector<1x128xf32>
    %103 = vector.extract_strided_slice %0 {offsets = [3, 0], sizes = [1, 128], strides = [1, 1]} : vector<4x128xf32> to vector<1x128xf32>
    %104 = arith.mulf %102, %103 : vector<1x128xf32>
    %105 = arith.addf %101, %104 : vector<1x128xf32>
    %106 = arith.mulf %105, %105 : vector<1x128xf32>
    %107 = arith.addf %88, %106 : vector<1x128xf32>
    %cst_20 = arith.constant 0.000000e+00 : f32
    %108 = vector.broadcast %cst_20 : f32 to vector<1x128xf32>
    %109 = vector.extract_strided_slice %28 {offsets = [0, 0], sizes = [1, 128], strides = [1, 1]} : vector<16x128xf32> to vector<1x128xf32>
    %110 = vector.extract_strided_slice %28 {offsets = [0, 0], sizes = [1, 128], strides = [1, 1]} : vector<16x128xf32> to vector<1x128xf32>
    %111 = arith.mulf %109, %110 : vector<1x128xf32>
    %112 = vector.extract_strided_slice %28 {offsets = [4, 0], sizes = [1, 128], strides = [1, 1]} : vector<16x128xf32> to vector<1x128xf32>
    %113 = vector.extract_strided_slice %28 {offsets = [4, 0], sizes = [1, 128], strides = [1, 1]} : vector<16x128xf32> to vector<1x128xf32>
    %114 = arith.mulf %112, %113 : vector<1x128xf32>
    %115 = arith.addf %111, %114 : vector<1x128xf32>
    %116 = vector.extract_strided_slice %28 {offsets = [8, 0], sizes = [1, 128], strides = [1, 1]} : vector<16x128xf32> to vector<1x128xf32>
    %117 = vector.extract_strided_slice %28 {offsets = [8, 0], sizes = [1, 128], strides = [1, 1]} : vector<16x128xf32> to vector<1x128xf32>
    %118 = arith.mulf %116, %117 : vector<1x128xf32>
    %119 = arith.addf %115, %118 : vector<1x128xf32>
    %120 = vector.extract_strided_slice %28 {offsets = [12, 0], sizes = [1, 128], strides = [1, 1]} : vector<16x128xf32> to vector<1x128xf32>
    %121 = vector.extract_strided_slice %28 {offsets = [12, 0], sizes = [1, 128], strides = [1, 1]} : vector<16x128xf32> to vector<1x128xf32>
    %122 = arith.mulf %120, %121 : vector<1x128xf32>
    %123 = arith.addf %119, %122 : vector<1x128xf32>
    %c8_21 = arith.constant 8 : index
    %c0_22 = arith.constant 0 : index
    %124 = vector.load %arg1[%c8_21, %c0_22] : memref<64x128xf32, #tpu.memory_space<vmem>>, vector<1x128xf32>
    %125 = arith.mulf %123, %124 : vector<1x128xf32>
    %126 = arith.addf %108, %125 : vector<1x128xf32>
    %127 = vector.extract_strided_slice %28 {offsets = [0, 0], sizes = [1, 128], strides = [1, 1]} : vector<16x128xf32> to vector<1x128xf32>
    %128 = vector.extract_strided_slice %28 {offsets = [1, 0], sizes = [1, 128], strides = [1, 1]} : vector<16x128xf32> to vector<1x128xf32>
    %129 = arith.mulf %127, %128 : vector<1x128xf32>
    %130 = vector.extract_strided_slice %28 {offsets = [4, 0], sizes = [1, 128], strides = [1, 1]} : vector<16x128xf32> to vector<1x128xf32>
    %131 = vector.extract_strided_slice %28 {offsets = [5, 0], sizes = [1, 128], strides = [1, 1]} : vector<16x128xf32> to vector<1x128xf32>
    %132 = arith.mulf %130, %131 : vector<1x128xf32>
    %133 = arith.addf %129, %132 : vector<1x128xf32>
    %134 = vector.extract_strided_slice %28 {offsets = [8, 0], sizes = [1, 128], strides = [1, 1]} : vector<16x128xf32> to vector<1x128xf32>
    %135 = vector.extract_strided_slice %28 {offsets = [9, 0], sizes = [1, 128], strides = [1, 1]} : vector<16x128xf32> to vector<1x128xf32>
    %136 = arith.mulf %134, %135 : vector<1x128xf32>
    %137 = arith.addf %133, %136 : vector<1x128xf32>
    %138 = vector.extract_strided_slice %28 {offsets = [12, 0], sizes = [1, 128], strides = [1, 1]} : vector<16x128xf32> to vector<1x128xf32>
    %139 = vector.extract_strided_slice %28 {offsets = [13, 0], sizes = [1, 128], strides = [1, 1]} : vector<16x128xf32> to vector<1x128xf32>
    %140 = arith.mulf %138, %139 : vector<1x128xf32>
    %141 = arith.addf %137, %140 : vector<1x128xf32>
    %c9 = arith.constant 9 : index
    %c0_23 = arith.constant 0 : index
    %142 = vector.load %arg1[%c9, %c0_23] : memref<64x128xf32, #tpu.memory_space<vmem>>, vector<1x128xf32>
    %c12 = arith.constant 12 : index
    %c0_24 = arith.constant 0 : index
    %143 = vector.load %arg1[%c12, %c0_24] : memref<64x128xf32, #tpu.memory_space<vmem>>, vector<1x128xf32>
    %144 = arith.addf %142, %143 : vector<1x128xf32>
    %145 = arith.mulf %141, %144 : vector<1x128xf32>
    %146 = arith.addf %126, %145 : vector<1x128xf32>
    %147 = vector.extract_strided_slice %28 {offsets = [0, 0], sizes = [1, 128], strides = [1, 1]} : vector<16x128xf32> to vector<1x128xf32>
    %148 = vector.extract_strided_slice %28 {offsets = [2, 0], sizes = [1, 128], strides = [1, 1]} : vector<16x128xf32> to vector<1x128xf32>
    %149 = arith.mulf %147, %148 : vector<1x128xf32>
    %150 = vector.extract_strided_slice %28 {offsets = [4, 0], sizes = [1, 128], strides = [1, 1]} : vector<16x128xf32> to vector<1x128xf32>
    %151 = vector.extract_strided_slice %28 {offsets = [6, 0], sizes = [1, 128], strides = [1, 1]} : vector<16x128xf32> to vector<1x128xf32>
    %152 = arith.mulf %150, %151 : vector<1x128xf32>
    %153 = arith.addf %149, %152 : vector<1x128xf32>
    %154 = vector.extract_strided_slice %28 {offsets = [8, 0], sizes = [1, 128], strides = [1, 1]} : vector<16x128xf32> to vector<1x128xf32>
    %155 = vector.extract_strided_slice %28 {offsets = [10, 0], sizes = [1, 128], strides = [1, 1]} : vector<16x128xf32> to vector<1x128xf32>
    %156 = arith.mulf %154, %155 : vector<1x128xf32>
    %157 = arith.addf %153, %156 : vector<1x128xf32>
    %158 = vector.extract_strided_slice %28 {offsets = [12, 0], sizes = [1, 128], strides = [1, 1]} : vector<16x128xf32> to vector<1x128xf32>
    %159 = vector.extract_strided_slice %28 {offsets = [14, 0], sizes = [1, 128], strides = [1, 1]} : vector<16x128xf32> to vector<1x128xf32>
    %160 = arith.mulf %158, %159 : vector<1x128xf32>
    %161 = arith.addf %157, %160 : vector<1x128xf32>
    %c10 = arith.constant 10 : index
    %c0_25 = arith.constant 0 : index
    %162 = vector.load %arg1[%c10, %c0_25] : memref<64x128xf32, #tpu.memory_space<vmem>>, vector<1x128xf32>
    %c16 = arith.constant 16 : index
    %c0_26 = arith.constant 0 : index
    %163 = vector.load %arg1[%c16, %c0_26] : memref<64x128xf32, #tpu.memory_space<vmem>>, vector<1x128xf32>
    %164 = arith.addf %162, %163 : vector<1x128xf32>
    %165 = arith.mulf %161, %164 : vector<1x128xf32>
    %166 = arith.addf %146, %165 : vector<1x128xf32>
    %167 = vector.extract_strided_slice %28 {offsets = [0, 0], sizes = [1, 128], strides = [1, 1]} : vector<16x128xf32> to vector<1x128xf32>
    %168 = vector.extract_strided_slice %28 {offsets = [3, 0], sizes = [1, 128], strides = [1, 1]} : vector<16x128xf32> to vector<1x128xf32>
    %169 = arith.mulf %167, %168 : vector<1x128xf32>
    %170 = vector.extract_strided_slice %28 {offsets = [4, 0], sizes = [1, 128], strides = [1, 1]} : vector<16x128xf32> to vector<1x128xf32>
    %171 = vector.extract_strided_slice %28 {offsets = [7, 0], sizes = [1, 128], strides = [1, 1]} : vector<16x128xf32> to vector<1x128xf32>
    %172 = arith.mulf %170, %171 : vector<1x128xf32>
    %173 = arith.addf %169, %172 : vector<1x128xf32>
    %174 = vector.extract_strided_slice %28 {offsets = [8, 0], sizes = [1, 128], strides = [1, 1]} : vector<16x128xf32> to vector<1x128xf32>
    %175 = vector.extract_strided_slice %28 {offsets = [11, 0], sizes = [1, 128], strides = [1, 1]} : vector<16x128xf32> to vector<1x128xf32>
    %176 = arith.mulf %174, %175 : vector<1x128xf32>
    %177 = arith.addf %173, %176 : vector<1x128xf32>
    %178 = vector.extract_strided_slice %28 {offsets = [12, 0], sizes = [1, 128], strides = [1, 1]} : vector<16x128xf32> to vector<1x128xf32>
    %179 = vector.extract_strided_slice %28 {offsets = [15, 0], sizes = [1, 128], strides = [1, 1]} : vector<16x128xf32> to vector<1x128xf32>
    %180 = arith.mulf %178, %179 : vector<1x128xf32>
    %181 = arith.addf %177, %180 : vector<1x128xf32>
    %c11 = arith.constant 11 : index
    %c0_27 = arith.constant 0 : index
    %182 = vector.load %arg1[%c11, %c0_27] : memref<64x128xf32, #tpu.memory_space<vmem>>, vector<1x128xf32>
    %c20 = arith.constant 20 : index
    %c0_28 = arith.constant 0 : index
    %183 = vector.load %arg1[%c20, %c0_28] : memref<64x128xf32, #tpu.memory_space<vmem>>, vector<1x128xf32>
    %184 = arith.addf %182, %183 : vector<1x128xf32>
    %185 = arith.mulf %181, %184 : vector<1x128xf32>
    %186 = arith.addf %166, %185 : vector<1x128xf32>
    %187 = vector.extract_strided_slice %28 {offsets = [1, 0], sizes = [1, 128], strides = [1, 1]} : vector<16x128xf32> to vector<1x128xf32>
    %188 = vector.extract_strided_slice %28 {offsets = [1, 0], sizes = [1, 128], strides = [1, 1]} : vector<16x128xf32> to vector<1x128xf32>
    %189 = arith.mulf %187, %188 : vector<1x128xf32>
    %190 = vector.extract_strided_slice %28 {offsets = [5, 0], sizes = [1, 128], strides = [1, 1]} : vector<16x128xf32> to vector<1x128xf32>
    %191 = vector.extract_strided_slice %28 {offsets = [5, 0], sizes = [1, 128], strides = [1, 1]} : vector<16x128xf32> to vector<1x128xf32>
    %192 = arith.mulf %190, %191 : vector<1x128xf32>
    %193 = arith.addf %189, %192 : vector<1x128xf32>
    %194 = vector.extract_strided_slice %28 {offsets = [9, 0], sizes = [1, 128], strides = [1, 1]} : vector<16x128xf32> to vector<1x128xf32>
    %195 = vector.extract_strided_slice %28 {offsets = [9, 0], sizes = [1, 128], strides = [1, 1]} : vector<16x128xf32> to vector<1x128xf32>
    %196 = arith.mulf %194, %195 : vector<1x128xf32>
    %197 = arith.addf %193, %196 : vector<1x128xf32>
    %198 = vector.extract_strided_slice %28 {offsets = [13, 0], sizes = [1, 128], strides = [1, 1]} : vector<16x128xf32> to vector<1x128xf32>
    %199 = vector.extract_strided_slice %28 {offsets = [13, 0], sizes = [1, 128], strides = [1, 1]} : vector<16x128xf32> to vector<1x128xf32>
    %200 = arith.mulf %198, %199 : vector<1x128xf32>
    %201 = arith.addf %197, %200 : vector<1x128xf32>
    %c13 = arith.constant 13 : index
    %c0_29 = arith.constant 0 : index
    %202 = vector.load %arg1[%c13, %c0_29] : memref<64x128xf32, #tpu.memory_space<vmem>>, vector<1x128xf32>
    %203 = arith.mulf %201, %202 : vector<1x128xf32>
    %204 = arith.addf %186, %203 : vector<1x128xf32>
    %205 = vector.extract_strided_slice %28 {offsets = [1, 0], sizes = [1, 128], strides = [1, 1]} : vector<16x128xf32> to vector<1x128xf32>
    %206 = vector.extract_strided_slice %28 {offsets = [2, 0], sizes = [1, 128], strides = [1, 1]} : vector<16x128xf32> to vector<1x128xf32>
    %207 = arith.mulf %205, %206 : vector<1x128xf32>
    %208 = vector.extract_strided_slice %28 {offsets = [5, 0], sizes = [1, 128], strides = [1, 1]} : vector<16x128xf32> to vector<1x128xf32>
    %209 = vector.extract_strided_slice %28 {offsets = [6, 0], sizes = [1, 128], strides = [1, 1]} : vector<16x128xf32> to vector<1x128xf32>
    %210 = arith.mulf %208, %209 : vector<1x128xf32>
    %211 = arith.addf %207, %210 : vector<1x128xf32>
    %212 = vector.extract_strided_slice %28 {offsets = [9, 0], sizes = [1, 128], strides = [1, 1]} : vector<16x128xf32> to vector<1x128xf32>
    %213 = vector.extract_strided_slice %28 {offsets = [10, 0], sizes = [1, 128], strides = [1, 1]} : vector<16x128xf32> to vector<1x128xf32>
    %214 = arith.mulf %212, %213 : vector<1x128xf32>
    %215 = arith.addf %211, %214 : vector<1x128xf32>
    %216 = vector.extract_strided_slice %28 {offsets = [13, 0], sizes = [1, 128], strides = [1, 1]} : vector<16x128xf32> to vector<1x128xf32>
    %217 = vector.extract_strided_slice %28 {offsets = [14, 0], sizes = [1, 128], strides = [1, 1]} : vector<16x128xf32> to vector<1x128xf32>
    %218 = arith.mulf %216, %217 : vector<1x128xf32>
    %219 = arith.addf %215, %218 : vector<1x128xf32>
    %c14 = arith.constant 14 : index
    %c0_30 = arith.constant 0 : index
    %220 = vector.load %arg1[%c14, %c0_30] : memref<64x128xf32, #tpu.memory_space<vmem>>, vector<1x128xf32>
    %c17 = arith.constant 17 : index
    %c0_31 = arith.constant 0 : index
    %221 = vector.load %arg1[%c17, %c0_31] : memref<64x128xf32, #tpu.memory_space<vmem>>, vector<1x128xf32>
    %222 = arith.addf %220, %221 : vector<1x128xf32>
    %223 = arith.mulf %219, %222 : vector<1x128xf32>
    %224 = arith.addf %204, %223 : vector<1x128xf32>
    %225 = vector.extract_strided_slice %28 {offsets = [1, 0], sizes = [1, 128], strides = [1, 1]} : vector<16x128xf32> to vector<1x128xf32>
    %226 = vector.extract_strided_slice %28 {offsets = [3, 0], sizes = [1, 128], strides = [1, 1]} : vector<16x128xf32> to vector<1x128xf32>
    %227 = arith.mulf %225, %226 : vector<1x128xf32>
    %228 = vector.extract_strided_slice %28 {offsets = [5, 0], sizes = [1, 128], strides = [1, 1]} : vector<16x128xf32> to vector<1x128xf32>
    %229 = vector.extract_strided_slice %28 {offsets = [7, 0], sizes = [1, 128], strides = [1, 1]} : vector<16x128xf32> to vector<1x128xf32>
    %230 = arith.mulf %228, %229 : vector<1x128xf32>
    %231 = arith.addf %227, %230 : vector<1x128xf32>
    %232 = vector.extract_strided_slice %28 {offsets = [9, 0], sizes = [1, 128], strides = [1, 1]} : vector<16x128xf32> to vector<1x128xf32>
    %233 = vector.extract_strided_slice %28 {offsets = [11, 0], sizes = [1, 128], strides = [1, 1]} : vector<16x128xf32> to vector<1x128xf32>
    %234 = arith.mulf %232, %233 : vector<1x128xf32>
    %235 = arith.addf %231, %234 : vector<1x128xf32>
    %236 = vector.extract_strided_slice %28 {offsets = [13, 0], sizes = [1, 128], strides = [1, 1]} : vector<16x128xf32> to vector<1x128xf32>
    %237 = vector.extract_strided_slice %28 {offsets = [15, 0], sizes = [1, 128], strides = [1, 1]} : vector<16x128xf32> to vector<1x128xf32>
    %238 = arith.mulf %236, %237 : vector<1x128xf32>
    %239 = arith.addf %235, %238 : vector<1x128xf32>
    %c15 = arith.constant 15 : index
    %c0_32 = arith.constant 0 : index
    %240 = vector.load %arg1[%c15, %c0_32] : memref<64x128xf32, #tpu.memory_space<vmem>>, vector<1x128xf32>
    %c21 = arith.constant 21 : index
    %c0_33 = arith.constant 0 : index
    %241 = vector.load %arg1[%c21, %c0_33] : memref<64x128xf32, #tpu.memory_space<vmem>>, vector<1x128xf32>
    %242 = arith.addf %240, %241 : vector<1x128xf32>
    %243 = arith.mulf %239, %242 : vector<1x128xf32>
    %244 = arith.addf %224, %243 : vector<1x128xf32>
    %245 = vector.extract_strided_slice %28 {offsets = [2, 0], sizes = [1, 128], strides = [1, 1]} : vector<16x128xf32> to vector<1x128xf32>
    %246 = vector.extract_strided_slice %28 {offsets = [2, 0], sizes = [1, 128], strides = [1, 1]} : vector<16x128xf32> to vector<1x128xf32>
    %247 = arith.mulf %245, %246 : vector<1x128xf32>
    %248 = vector.extract_strided_slice %28 {offsets = [6, 0], sizes = [1, 128], strides = [1, 1]} : vector<16x128xf32> to vector<1x128xf32>
    %249 = vector.extract_strided_slice %28 {offsets = [6, 0], sizes = [1, 128], strides = [1, 1]} : vector<16x128xf32> to vector<1x128xf32>
    %250 = arith.mulf %248, %249 : vector<1x128xf32>
    %251 = arith.addf %247, %250 : vector<1x128xf32>
    %252 = vector.extract_strided_slice %28 {offsets = [10, 0], sizes = [1, 128], strides = [1, 1]} : vector<16x128xf32> to vector<1x128xf32>
    %253 = vector.extract_strided_slice %28 {offsets = [10, 0], sizes = [1, 128], strides = [1, 1]} : vector<16x128xf32> to vector<1x128xf32>
    %254 = arith.mulf %252, %253 : vector<1x128xf32>
    %255 = arith.addf %251, %254 : vector<1x128xf32>
    %256 = vector.extract_strided_slice %28 {offsets = [14, 0], sizes = [1, 128], strides = [1, 1]} : vector<16x128xf32> to vector<1x128xf32>
    %257 = vector.extract_strided_slice %28 {offsets = [14, 0], sizes = [1, 128], strides = [1, 1]} : vector<16x128xf32> to vector<1x128xf32>
    %258 = arith.mulf %256, %257 : vector<1x128xf32>
    %259 = arith.addf %255, %258 : vector<1x128xf32>
    %c18 = arith.constant 18 : index
    %c0_34 = arith.constant 0 : index
    %260 = vector.load %arg1[%c18, %c0_34] : memref<64x128xf32, #tpu.memory_space<vmem>>, vector<1x128xf32>
    %261 = arith.mulf %259, %260 : vector<1x128xf32>
    %262 = arith.addf %244, %261 : vector<1x128xf32>
    %263 = vector.extract_strided_slice %28 {offsets = [2, 0], sizes = [1, 128], strides = [1, 1]} : vector<16x128xf32> to vector<1x128xf32>
    %264 = vector.extract_strided_slice %28 {offsets = [3, 0], sizes = [1, 128], strides = [1, 1]} : vector<16x128xf32> to vector<1x128xf32>
    %265 = arith.mulf %263, %264 : vector<1x128xf32>
    %266 = vector.extract_strided_slice %28 {offsets = [6, 0], sizes = [1, 128], strides = [1, 1]} : vector<16x128xf32> to vector<1x128xf32>
    %267 = vector.extract_strided_slice %28 {offsets = [7, 0], sizes = [1, 128], strides = [1, 1]} : vector<16x128xf32> to vector<1x128xf32>
    %268 = arith.mulf %266, %267 : vector<1x128xf32>
    %269 = arith.addf %265, %268 : vector<1x128xf32>
    %270 = vector.extract_strided_slice %28 {offsets = [10, 0], sizes = [1, 128], strides = [1, 1]} : vector<16x128xf32> to vector<1x128xf32>
    %271 = vector.extract_strided_slice %28 {offsets = [11, 0], sizes = [1, 128], strides = [1, 1]} : vector<16x128xf32> to vector<1x128xf32>
    %272 = arith.mulf %270, %271 : vector<1x128xf32>
    %273 = arith.addf %269, %272 : vector<1x128xf32>
    %274 = vector.extract_strided_slice %28 {offsets = [14, 0], sizes = [1, 128], strides = [1, 1]} : vector<16x128xf32> to vector<1x128xf32>
    %275 = vector.extract_strided_slice %28 {offsets = [15, 0], sizes = [1, 128], strides = [1, 1]} : vector<16x128xf32> to vector<1x128xf32>
    %276 = arith.mulf %274, %275 : vector<1x128xf32>
    %277 = arith.addf %273, %276 : vector<1x128xf32>
    %c19 = arith.constant 19 : index
    %c0_35 = arith.constant 0 : index
    %278 = vector.load %arg1[%c19, %c0_35] : memref<64x128xf32, #tpu.memory_space<vmem>>, vector<1x128xf32>
    %c22 = arith.constant 22 : index
    %c0_36 = arith.constant 0 : index
    %279 = vector.load %arg1[%c22, %c0_36] : memref<64x128xf32, #tpu.memory_space<vmem>>, vector<1x128xf32>
    %280 = arith.addf %278, %279 : vector<1x128xf32>
    %281 = arith.mulf %277, %280 : vector<1x128xf32>
    %282 = arith.addf %262, %281 : vector<1x128xf32>
    %283 = vector.extract_strided_slice %28 {offsets = [3, 0], sizes = [1, 128], strides = [1, 1]} : vector<16x128xf32> to vector<1x128xf32>
    %284 = vector.extract_strided_slice %28 {offsets = [3, 0], sizes = [1, 128], strides = [1, 1]} : vector<16x128xf32> to vector<1x128xf32>
    %285 = arith.mulf %283, %284 : vector<1x128xf32>
    %286 = vector.extract_strided_slice %28 {offsets = [7, 0], sizes = [1, 128], strides = [1, 1]} : vector<16x128xf32> to vector<1x128xf32>
    %287 = vector.extract_strided_slice %28 {offsets = [7, 0], sizes = [1, 128], strides = [1, 1]} : vector<16x128xf32> to vector<1x128xf32>
    %288 = arith.mulf %286, %287 : vector<1x128xf32>
    %289 = arith.addf %285, %288 : vector<1x128xf32>
    %290 = vector.extract_strided_slice %28 {offsets = [11, 0], sizes = [1, 128], strides = [1, 1]} : vector<16x128xf32> to vector<1x128xf32>
    %291 = vector.extract_strided_slice %28 {offsets = [11, 0], sizes = [1, 128], strides = [1, 1]} : vector<16x128xf32> to vector<1x128xf32>
    %292 = arith.mulf %290, %291 : vector<1x128xf32>
    %293 = arith.addf %289, %292 : vector<1x128xf32>
    %294 = vector.extract_strided_slice %28 {offsets = [15, 0], sizes = [1, 128], strides = [1, 1]} : vector<16x128xf32> to vector<1x128xf32>
    %295 = vector.extract_strided_slice %28 {offsets = [15, 0], sizes = [1, 128], strides = [1, 1]} : vector<16x128xf32> to vector<1x128xf32>
    %296 = arith.mulf %294, %295 : vector<1x128xf32>
    %297 = arith.addf %293, %296 : vector<1x128xf32>
    %c23 = arith.constant 23 : index
    %c0_37 = arith.constant 0 : index
    %298 = vector.load %arg1[%c23, %c0_37] : memref<64x128xf32, #tpu.memory_space<vmem>>, vector<1x128xf32>
    %299 = arith.mulf %297, %298 : vector<1x128xf32>
    %300 = arith.addf %282, %299 : vector<1x128xf32>
    %301 = arith.addf %107, %300 : vector<1x128xf32>
    %302 = arith.mulf %5, %301 : vector<1x128xf32>
    %303 = vector.shape_cast %302 : vector<1x128xf32> to vector<1x1x128xf32>
    %cst_38 = arith.constant dense<0.000000e+00> : vector<1xf32>
    %304 = vector.multi_reduction <add>, %303, %cst_38 [1, 2] : vector<1x1x128xf32> to vector<1xf32>
    %305 = vector.shape_cast %304 : vector<1xf32> to vector<1x1x1xf32>
    %306 = vector.extract %305[0, 0, 0] : f32 from vector<1x1x1xf32>
    %cst_39 = arith.constant 5.000000e-01 : f32
    %307 = arith.mulf %cst_39, %306 : f32
    %308 = tpu.iota {dimensions = array<i32: 0>} : vector<8x128xi32>
    %c0_i32 = arith.constant 0 : i32
    %309 = vector.broadcast %c0_i32 : i32 to vector<8x128xi32>
    %310 = arith.cmpi eq, %308, %309 : vector<8x128xi32>
    %cst_40 = arith.constant 0.000000e+00 : f32
    %311 = vector.broadcast %26 : f32 to vector<8x128xf32>
    %312 = vector.broadcast %cst_40 : f32 to vector<8x128xf32>
    %313 = arith.select %310, %311, %312 : vector<8x128xi1>, vector<8x128xf32>
    %c1_i32 = arith.constant 1 : i32
    %314 = vector.broadcast %c1_i32 : i32 to vector<8x128xi32>
    %315 = arith.cmpi eq, %308, %314 : vector<8x128xi32>
    %cst_41 = arith.constant 0.000000e+00 : f32
    %316 = vector.broadcast %307 : f32 to vector<8x128xf32>
    %317 = vector.broadcast %cst_41 : f32 to vector<8x128xf32>
    %318 = arith.select %315, %316, %317 : vector<8x128xi1>, vector<8x128xf32>
    %319 = arith.addf %313, %318 : vector<8x128xf32>
    %320 = vector.shape_cast %319 : vector<8x128xf32> to vector<1x8x128xf32>
    %c0_42 = arith.constant 0 : index
    %c0_43 = arith.constant 0 : index
    %c0_44 = arith.constant 0 : index
    %321 = vector.load %arg7[%c0_42, %c0_43, %c0_44] : memref<1x8x128xf32, #tpu.memory_space<vmem>>, vector<1x8x128xf32>
    tpu.vector_store %arg7[%c0_42, %c0_43, %c0_44], %320 {strides = array<i32>} : memref<1x8x128xf32, #tpu.memory_space<vmem>>, vector<1x8x128xf32>,
    return
  }
  func.func @transform_0(%arg0: i32) -> (i32, i32) {
    %c0_i32 = arith.constant 0 : i32
    %c0_i32_0 = arith.constant 0 : i32
    return %c0_i32, %arg0 : i32, i32
  }
  func.func @transform_1(%arg0: i32) -> (i32, i32) {
    %c0_i32 = arith.constant 0 : i32
    %c0_i32_0 = arith.constant 0 : i32
    %c0_i32_1 = arith.constant 0 : i32
    return %c0_i32, %c0_i32_0 : i32, i32
  }
  func.func @transform_2(%arg0: i32) -> (i32, i32) {
    %c0_i32 = arith.constant 0 : i32
    %c0_i32_0 = arith.constant 0 : i32
    %c0_i32_1 = arith.constant 0 : i32
    return %c0_i32, %c0_i32_0 : i32, i32
  }
  func.func @transform_3(%arg0: i32) -> (i32, i32) {
    %c0_i32 = arith.constant 0 : i32
    %c0_i32_0 = arith.constant 0 : i32
    %c0_i32_1 = arith.constant 0 : i32
    return %c0_i32, %c0_i32_0 : i32, i32
  }
  func.func @transform_4(%arg0: i32) -> (i32, i32) {
    %c0_i32 = arith.constant 0 : i32
    %c0_i32_0 = arith.constant 0 : i32
    %c0_i32_1 = arith.constant 0 : i32
    return %c0_i32, %c0_i32_0 : i32, i32
  }
  func.func @transform_5(%arg0: i32) -> (i32, i32) {
    %c0_i32 = arith.constant 0 : i32
    %c0_i32_0 = arith.constant 0 : i32
    %c0_i32_1 = arith.constant 0 : i32
    return %c0_i32, %c0_i32_0 : i32, i32
  }
  func.func @transform_6(%arg0: i32) -> (i32, i32, i32) {
    %c0_i32 = arith.constant 0 : i32
    %c0_i32_0 = arith.constant 0 : i32
    %c0_i32_1 = arith.constant 0 : i32
    return %arg0, %c0_i32, %c0_i32_0 : i32, i32, i32
  }
}

</mosaic_0001>

<bundles_post_ra>
// kernel: tpu_custom_call.1
= control target key start
LH: loop header
LB: loop body
LE: loop exit
PB: predicated region body
PF: predicated region fallthrough
CT: control target
= control target key end

     0   :  { %11 = vsyncpa [#allocation3], 0  ;;  %s1281_s0 = inlined_call_operand.hbm [shape: f32[64,384], index: 0, kind: input, shape index: {}]   ;;  %s1282_s1 = inlined_call_operand.vmem [shape: f32[4,4], index: 1, kind: input, shape index: {}]   ;;  %s1283_s2 = inlined_call_operand.vmem [shape: f32[4,16], index: 2, kind: input, shape index: {}]   ;;  %s1284_s3 = inlined_call_operand.vmem [shape: f32[4,1], index: 3, kind: input, shape index: {}]   ;;  %s1285_s4 = inlined_call_operand.vmem [shape: f32[16,1], index: 4, kind: input, shape index: {}]   ;;  %s1286_s5 = inlined_call_operand.vmem [shape: f32[4,1], index: 5, kind: input, shape index: {}]   ;;  %s1287_s6 = inlined_call_operand.hbm [shape: f32[3,8,128], index: 6, kind: output, shape index: {}]  }
   0x1   :  { %13 = vsyncpa [#allocation3 + $0x1], 0 }
   0x2   :  { %14 = vsyncpa [#allocation4], 0 }
   0x3   :  { %16 = vsyncpa [#allocation4 + $0x1], 0  ;;  %s1023_s21 = smov 0   ;;  %s1025_s22 = smov 0  }
   0x4   :  { %s1027_s23 = smov 0   ;;  %s1029_s24 = smov 0  }
   0x5 LB: > { %s1044_s25 = sadd.s32 4294967295, %s978_s24   ;;  %s794_s26 = sadd.s32 4294967294, %s978_s24   ;;  %s978_s24 = sphi %s1029_s24, %s1302_s24   ;;  %s974_s23 = sphi %s1027_s23, %s1301_s23   ;;  %s970_s22 = sphi %s1025_s22, %s1300_s22   ;;  %s966_s21 = sphi %s1023_s21, %s1299_s21  }
   0x6   : > { %s1048_s27 = sadd.s32 1, %s978_s24   ;;  %s29_s28 = sadd.s32 1, %s974_s23 }
   0x7   : > { %s26_s29 = ssub.s32 %s978_s24, %s1048_s27  ;;  %p36_p0 = scmp.ne.s32.totalorder %s974_s23, %s970_s22 }
   0x8   : > { %p27_p1 = scmp.eq.s32.totalorder %s26_s29, 0  ;;  %p37_p2 = scmp.eq.s32.totalorder %s978_s24, 0 }
   0x9   : > { %p42_p3 = scmp.ne.s32.totalorder %s970_s22, %s966_s21  ;;  %p43_p4 = scmp.eq.s32.totalorder %s1044_s25, 0 }
   0xa   : > { %s1060_s30 = scalar_select %p27_p1, %s974_s23, %s29_s28  }
   0xb   : > { %p1062_p5 = por %p37_p2, %p36_p0  ;;  %p1066_p6 = por %p43_p4, %p42_p3 }
   0xc   : > { %p171_p7 = scmp.eq.s32.totalorder %s1044_s25, 2  ;;  %p177_p8 = scmp.eq.s32.totalorder %s794_s26, 2 }
   0xd   : > { %s1291_s8 = scalar_select %p1066_p6, 1, 0 }
   0xe   : > { %p842_p9 = scmp.lt.s32.totalorder %s978_s24, 3  ;;  %p1072_p10 = por %p171_p7, %p36_p0 }
   0xf   : > { %p1076_p11 = por %p177_p8, %p42_p3  ;;  %s212_s11 = sand.u32 1, %s974_s23  }
  0x10   : > { %s1292_s9 = scalar_select %p1072_p10, 1, 0 }
  0x11   : > { %s1293_s10 = scalar_select %p1076_p11, 1, 0 }
  0x12   : > { %s798_s12 = sshll.u32 %s978_s24, 7  ;;  %s797_s13 = sshll.u32 %s212_s11, 6 }
  0x13   : > { %s1085_s16 = scalar_lea.hbm %s1281_s0, %s798_s12  ;;  %s216_s17 = scalar_lea.vmem [#allocation2], %s797_s13 }
  0x14   : > { %s222_s18 = sshll.u32 %s216_s17, 4  ;;  %p1089_p12 = pnand %p842_p9, %p1062_p5  ;;  %s1093_s18 = int_to_ptr.vmem [resolvable:$true] %s222_s18 }
  0x15   : > { %s1096_s20 = scalar_lea.sflag [#allocation3], %s212_s11  ;;  %s886_s26 = scalar_lea.hbm %s1085_s16, 1024 }
  0x16   : > { %p887_p0 = scmp.ne.s32.totalorder %s1085_s16, %s886_s26  ;;  %p888_p1 = pneg %p1089_p12 }
  0x17   : > { %s891_s7 = scalar_lea.hbm %s1281_s0, 3072  ;;  %p892_p4 = scmp.lt.s32.totalorder %s1085_s16, %s1281_s0 }
  0x18   : > { %p889_p2 = pnand %p888_p1, %p887_p0  ;;  %p893_p5 = scmp.lt.s32.totalorder %s891_s7, %s886_s26 }
  0x1a   : > { %p890_p3 = pneg %p889_p2  ;;  %p894_p7 = por %p893_p5, %p892_p4 }
  0x1c   : > { %p895_p8 = pnand %p894_p7, %p890_p3 }
  0x1e   : > { %898 = shalt.err (!%p895_p8)
}
  0x1f   : > { %s899_s11 = scalar_lea.vmem %s1093_s18, 1024  ;;  %s980_s14 = smov [#allocation2]  }
  0x20   : > { %p900_p9 = scmp.ne.s32.totalorder %s1093_s18, %s899_s11  ;;  %s904_s15 = sshll.u32 %s980_s14, 4  ;;  %s905_s15 = int_to_ptr.vmem [resolvable:$false] %s904_s15 }
  0x21   : > { %s906_s17 = scalar_lea.vmem %s905_s15, 2048  ;;  %p907_p2 = scmp.lt.s32.totalorder %s1093_s18, %s905_s15 }
  0x22   : > { %p902_p13 = pnand %p900_p9, %p888_p1  ;;  %p908_p11 = scmp.lt.s32.totalorder %s906_s17, %s899_s11 }
  0x24   : > { %p903_p0 = pneg %p902_p13  ;;  %p909_p10 = por %p908_p11, %p907_p2 }
  0x26   : > { %p910_p6 = pnand %p909_p10, %p903_p0 }
  0x28   : > { %913 = shalt.err (!%p910_p6)
}
  0x29   : > { %s981_s26 = smov 384   ;;  %s982_s28 = smov 128  }
  0x2a   : > { %s983_s29 = smov 8   ;;  %p230_p13 = scmp.lt.s32.totalorder %s978_s24, 4 }
  0x2b   : > { %837 = dma.hbm_to_vmem [thread:$0]  (!%p1089_p12), %s1085_s16, 1024, %s1093_s18, %s1096_s20, %s981_s26, %s982_s28, %s983_s29  }
  0x2c   : > { %p1295_p1 = scmp.ge.s32.totalorder %s978_s24, 1 }
  0x2e   : > { %p231_p3 = pnand %p1295_p1, %p230_p13 }
  0x2f   : > { %s1121_s7 = sand.u32 (!%p231_p3), 1, %s970_s22   ;;  %p1296_p6 = scmp.ne.s32.totalorder (!%p231_p3), %s1291_s8, 0 }
  0x30   : > { %234 = sbr.rel (%p231_p3) target bundleno = 499 (0x1f3), region = 44  ;;  %s800_s12 = sshll.u32 (!%p231_p3), %s1121_s7, 6 }
  0x31   : > { %s237_s13 = scalar_lea.sflag (!%p231_p3), [#allocation3], %s1121_s7  ;;  %s1125_s11 = scalar_lea.vmem (!%p231_p3), [#allocation2], %s800_s12 }
  0x35   : > { %957 = dma.done.wait (%p1296_p6), %s237_s13, 1024  }
  0x36   : > { %959 = vsyncadd (%p1296_p6), %s237_s13, 4294966272  ;;  %v984_v0 = vmov 0.0   ;;  %vm985_vm0 = vmmov 0   ;;  %v986_v1 = vmov 0   ;;  %vm292_vm1 = vcmask 1043456   ;;  %v271_v3 = vld [vmem:[%s1125_s11 + $0x10] sm:$0xff] }
  0x37   : > { %814 = vmatprep.subr.mxu0 %v984_v0  ;;  %819 = vmatprep.subr.mxu1 %v984_v0  ;;  %vm288_vm2 = vcmask 31744   ;;  %v269_v2 = vld [vmem:[%s1125_s11] sm:$0xf]  ;;  %v270_v5 = vld [vmem:[%s1125_s11 + $0x8] sm:$0xff]  ;;  %vm366_vm3 = vcmask 130048   ;;  %v272_v11 = vld [vmem:[%s1125_s11 + $0x18] sm:$0xff] }
  0x38   : > { %816 = vmatprep.mubr.msk.f32.mxu0 %vm985_vm0, %v984_v0  ;;  %823 = vmatprep.mubr.msk.f32.mxu1 %vm985_vm0, %v984_v0  ;;  %v277_v4 = vld [vmem:[%s1282_s1] sm:$0xf]  ;;  %v281_v9 = vld [vmem:[%s1285_s4 + $0x8] sm:$0xff]  ;;  %v493_v12 = vrot.slane %v269_v2, 4  ;;  %v602_v28 = vld [vmem:[%s1125_s11 + $0x10] sm:$0x1] }
  0x39   : > { %882 = vset.pattern.permute.xlu0 %v986_v1  ;;  %883 = vset.pattern.permute.xlu1 %v986_v1  ;;  %v278_v6 = vld [vmem:[%s1283_s2] sm:$0xf]  ;;  %v274_v17 = vld [vmem:[%s1125_s11 + $0x28] sm:$0xf]  ;;  %v582_v23 = vld [vmem:[%s1125_s11 + $0xc] sm:$0x1] }
  0x3a   : > { %815 = vmatpush3.msk.msra.mxu0 %vm292_vm1, %v269_v2  ;;  %820 = vmatpush3.msra.mxu1 %v271_v3  ;;  %v280_v7 = vld [vmem:[%s1285_s4] sm:$0xff]  ;;  %v581_v22 = vld [vmem:[%s1125_s11 + $0x9] sm:$0x1]  ;;  %v601_v27 = vld [vmem:[%s1125_s11 + $0xa] sm:$0x1]  ;;  %vm688_vm4 = vcmask 1040384  }
  0x3b   : > { %817 = vmatmul.mubr.msk.f32.vlgmr.msra.gmra.mxu0 %vm288_vm2, %v277_v4  ;;  %821 = vmatprep.subr.mxu1 %v984_v0  ;;  %v279_v8 = vld [vmem:[%s1284_s3] sm:$0xf]  ;;  %v621_v31 = vld [vmem:[%s1125_s11 + $0xb] sm:$0x1]  ;;  %v622_v32 = vld [vmem:[%s1125_s11 + $0x14] sm:$0x1]  ;;  %v583_v43 = vadd.f32 %v582_v23, %v581_v22  ;;  %v1194_v45 = vadd.f32 %v602_v28, %v601_v27 }
  0x3c   : > { %822 = vmatpush3.msra.mxu1 %v270_v5  ;;  %463 = vperm.xlu0 %882, %v280_v7   ;;  %v282_v10 = vld [vmem:[%s1286_s5] sm:$0xf]  ;;  %v1179_v33 = vld [vmem:[%s1125_s11 + $0xd] sm:$0x1]  ;;  %v635_v38 = vld [vmem:[%s1125_s11 + $0xe] sm:$0x1]  ;;  %v1196_v46 = vadd.f32 %v622_v32, %v621_v31 }
  0x3d   : > { %824 = vmatmul.mubr.msk.f32.vlgmr.msra.gmra.mxu1 %vm366_vm3, %v278_v6  ;;  %285 = vperm.xlu1 %883, %v279_v8   ;;  %v273_v16 = vld [vmem:[%s1125_s11 + $0x20] sm:$0xff]  ;;  %v636_v39 = vld [vmem:[%s1125_s11 + $0x11] sm:$0x1]  ;;  %v628_v47 = vrot.slane %v1179_v33, 7  ;;  %v646_v0 = vld [vmem:[%s1125_s11 + $0xf] sm:$0x1] }
  0x3e   : > { %v1202_v51 = vadd.f32 %v636_v39, %v635_v38  ;;  %v647_v1 = vld [vmem:[%s1125_s11 + $0x15] sm:$0x1]  ;;  %v666_v31 = vld [vmem:[%s1125_s11 + $0x13] sm:$0x1]  ;;  %v667_v32 = vld [vmem:[%s1125_s11 + $0x16] sm:$0x1] }
  0x3f   : > { %s801_s13 = sshll.u32 %s1121_s7, 3  ;;  %s806_s8 = sshll.u32 %s1044_s25, 7 }
  0x40   : > { %468 = vperm.xlu0 %882, %v281_v9   ;;  %s268_s19 = scalar_lea.vmem [#allocation5], %s801_s13  ;;  %s722_s17 = scalar_lea.hbm %s1287_s6, %s806_s8 }
  0x41   : > { %475 = vperm.xlu1 %883, %v282_v10   ;;  %s724_s20 = sshll.u32 %s268_s19, 4  ;;  %s711_s26 = scalar_lea.sflag [#allocation4], %s1121_s7  ;;  %s725_s20 = int_to_ptr.vmem [resolvable:$true] %s724_s20 }
  0x42   : > { %s914_s28 = scalar_lea.vmem %s725_s20, 128  ;;  %p1297_p11 = scmp.ne.s32.totalorder %s1292_s9, 0 }
  0x43   : > { %p915_p10 = scmp.ne.s32.totalorder %s725_s20, %s914_s28  ;;  %s987_s29 = smov [#allocation5]  }
  0x44   : > { %s918_s25 = sshll.u32 %s987_s29, 4  ;;  %s919_s25 = int_to_ptr.vmem [resolvable:$false] %s918_s25 }
  0x45   : > { %p916_p12 = pnand %p915_p10, %p1297_p11  ;;  %s920_s12 = scalar_lea.vmem %s919_s25, 256 }
  0x46   : > { %p921_p5 = scmp.lt.s32.totalorder %s725_s20, %s919_s25  ;;  %p922_p7 = scmp.lt.s32.totalorder %s920_s12, %s914_s28 }
  0x47   : > { %p917_p4 = pneg %p916_p12 }
  0x48   : > { %p923_p8 = por %p922_p7, %p921_p5 }
  0x4a   : > { %p924_p9 = pnand %p923_p8, %p917_p4 }
  0xb7   : > { %v464_v13 = vpop.permute.xlu0 %463 }
  0xb8   : > { %v1154_v14 = vadd.f32 %v464_v13, %v272_v11  ;;  %v1156_v15 = vpop.permute.xlu1 %285  ;;  %v648_v13 = vadd.f32 %v647_v1, %v646_v0 }
  0xba   : > { %v1161_v18 = vmul.f32 %v493_v12, %v1154_v14  ;;  %v550_v19 = vmul.f32 %v1154_v14, %v1154_v14  ;;  %v565_v21 = vrot.slane %v1154_v14, 1  ;;  %v1174_v30 = vmul.f32 %v1154_v14, %v269_v2 }
  0xbb   : > { %v469_v20 = vpop.permute.xlu0 %468  ;;  %v586_v50 = vrot.slane %v1154_v14, 2  ;;  %v606_v59 = vrot.slane %v1154_v14, 3 }
  0xbc   : > { %v1168_v24 = vadd.f32 %v469_v20, %v273_v16  ;;  %v476_v25 = vpop.permute.xlu1 %475  ;;  %v497_v26 = vrot.slane %v1161_v18, 3  ;;  %v500_v34 = vrot.slane %v1161_v18, 4  ;;  %v552_v37 = vrot.slane %v550_v19, 4 }
  0xbd   : > { %v478_v29 = vsub.f32 %v476_v25, %v274_v17  ;;  %v567_v42 = vmul.f32 %v565_v21, %v1154_v14  ;;  %v482_v49 = vrot.slane %v1174_v30, 1  ;;  %v503_v53 = vrot.slane %v1161_v18, 5 }
  0xbe   : > { %v1183_v35 = vmul.f32 %v1168_v24, %v269_v2  ;;  %v1186_v36 = vmul.f32 %v493_v12, %v1168_v24  ;;  %v555_v41 = vmul.f32 %v1168_v24, %v1168_v24  ;;  %v554_v55 = vadd.f32 %v552_v37, %v550_v19  ;;  %v561_v19 = vld [vmem:[%s1125_s11 + $0x8] sm:$0x1] }
  0xbf   : > { %v499_v40 = vadd.f32 %v497_v26, %v478_v29  ;;  %v480_v48 = vadd.f32 %v1174_v30, %v478_v29  ;;  %v485_v56 = vrot.slane %v1174_v30, 2  ;;  %v569_v58 = vrot.slane %v567_v42, 4 }
  0xc0   : > { %v516_v44 = vrot.slane %v1183_v35, 6  ;;  %v533_v54 = vrot.slane %v1186_v36, 1  ;;  %v558_v57 = vrot.slane %v555_v41, 4  ;;  %v519_v61 = vrot.slane %v1183_v35, 7 }
  0xc1   : > { %v502_v52 = vadd.f32 %v500_v34, %v499_v40  ;;  %v556_v62 = vadd.f32 %v555_v41, %v554_v55  ;;  %v573_v63 = vrot.slane %v1168_v24, 1  ;;  %v484_v2 = vadd.f32 %v482_v49, %v480_v48 }
  0xc2   : > { %v518_v60 = vadd.f32 %v516_v44, %v478_v29  ;;  %v506_v3 = vrot.slane %v1161_v18, 6  ;;  %v571_v4 = vadd.f32 %v569_v58, %v567_v42  ;;  %v588_v5 = vmul.f32 %v586_v50, %v1154_v14 }
  0xc3   : > { %v505_v6 = vadd.f32 %v503_v53, %v502_v52  ;;  %v535_v7 = vadd.f32 %v533_v54, %v478_v29  ;;  %v536_v8 = vrot.slane %v1186_v36, 2  ;;  %v575_v9 = vmul.f32 %v573_v63, %v1168_v24 }
  0xc4   : > { %v1216_v10 = vadd.f32 %v558_v57, %v556_v62  ;;  %v590_v11 = vrot.slane %v588_v5, 4  ;;  %v593_v12 = vrot.slane %v1168_v24, 2  ;;  %v521_v16 = vadd.f32 %v519_v61, %v518_v60 }
  0xc5   : > { %v488_v17 = vrot.slane %v1174_v30, 3  ;;  %v539_v18 = vrot.slane %v1186_v36, 3  ;;  %v576_v20 = vadd.f32 %v575_v9, %v571_v4  ;;  %v487_v21 = vadd.f32 %v485_v56, %v484_v2 }
  0xc6   : > { %v578_v22 = vrot.slane %v575_v9, 4  ;;  %v592_v23 = vadd.f32 %v590_v11, %v588_v5  ;;  %v595_v25 = vmul.f32 %v593_v12, %v1168_v24  ;;  %v538_v26 = vadd.f32 %v536_v8, %v535_v7 }
  0xc7   : > { %v508_v27 = vadd.f32 %v506_v3, %v505_v6  ;;  %v608_v28 = vmul.f32 %v606_v59, %v1154_v14  ;;  %v613_v29 = vrot.slane %v1168_v24, 3  ;;  %v562_v34 = vmul.f32 %v561_v19, %v1216_v10  ;;  %v677_v3 = vld [vmem:[%s1125_s11 + $0x17] sm:$0x1] }
  0xc8   : > { %v580_v30 = vadd.f32 %v578_v22, %v576_v20  ;;  %v596_v37 = vadd.f32 %v595_v25, %v592_v23  ;;  %v598_v38 = vrot.slane %v595_v25, 4  ;;  %v522_v39 = vadd.f32 %v521_v16, %v1183_v35 }
  0xc9   : > { %v523_v40 = vrot.slane %v1183_v35, 1  ;;  %v610_v41 = vrot.slane %v608_v28, 4  ;;  %v615_v42 = vmul.f32 %v613_v29, %v1168_v24  ;;  %v639_v14 = vrot.slane %v1202_v51, 7  ;;  %v657_v35 = vld [vmem:[%s1125_s11 + $0x12] sm:$0x1] }
  0xca   : > { %v584_v44 = vmul.f32 %v583_v43, %v580_v30  ;;  %v600_v48 = vadd.f32 %v598_v38, %v596_v37  ;;  %v668_v49 = vadd.f32 %v667_v32, %v666_v31  ;;  %v490_v50 = vadd.f32 %v488_v17, %v487_v21  ;;  %v276_v31 = vld [vmem:[%s1125_s11 + $0x38] sm:$0x1] }
  0xcb   : > { %v542_v52 = vrot.slane %v1186_v36, 4  ;;  %v612_v53 = vadd.f32 %v610_v41, %v608_v28  ;;  %v618_v54 = vrot.slane %v615_v42, 4  ;;  %v509_v55 = vmul.f32 %v508_v27, %v508_v27 }
  0xcc   : > { %v541_v56 = vadd.f32 %v539_v18, %v538_v26  ;;  %v585_v57 = vadd.f32 %v584_v44, %v562_v34  ;;  %v604_v58 = vmul.f32 %v1194_v45, %v600_v48  ;;  %v525_v59 = vadd.f32 %v523_v40, %v522_v39 }
  0xcd   : > { %v616_v60 = vadd.f32 %v615_v42, %v612_v53  ;;  %v630_v24 = vmul.f32 %v628_v47, %v1216_v10  ;;  %v650_v43 = vrot.slane %v648_v13, 7  ;;  %v641_v62 = vmul.f32 %v639_v14, %v580_v30 }
  0xce   : > { %v605_v51 = vadd.f32 %v604_v58, %v585_v57  ;;  %v659_v36 = vrot.slane %v657_v35, 6  ;;  %v491_v63 = vmul.f32 %v490_v50, %v490_v50  ;;  %v511_v0 = vrot.slane %v509_v55, 1 }
  0xcf   : > { %v620_v61 = vadd.f32 %v618_v54, %v616_v60  ;;  %v544_v1 = vadd.f32 %v542_v52, %v541_v56  ;;  %v670_v2 = vrot.slane %v668_v49, 6  ;;  %v526_v4 = vmul.f32 %v525_v59, %v525_v59  ;;  %v275_v52 = vld [vmem:[%s1125_s11 + $0x30] sm:$0xf] }
  0xd0   : > { %v632_v5 = vrot.slane %v630_v24, 1  ;;  %v652_v6 = vmul.f32 %v650_v43, %v600_v48  ;;  %v643_v8 = vrot.slane %v641_v62, 1  ;;  %v661_v33 = vmul.f32 %v659_v36, %v1216_v10 }
  0xd1   : > { %v624_v45 = vmul.f32 %v1196_v46, %v620_v61  ;;  %v679_v47 = vrot.slane %v677_v3, 5  ;;  %v513_v9 = vadd.f32 %v511_v0, %v491_v63  ;;  %v545_v11 = vmul.f32 %v544_v1, %v544_v1 }
  0xd2   : > { %v528_v12 = vrot.slane %v526_v4, 2  ;;  %v654_v16 = vrot.slane %v652_v6, 1  ;;  %v672_v17 = vmul.f32 %v670_v2, %v580_v30  ;;  %v663_v19 = vrot.slane %v661_v33, 2 }
  0xd3   : > { %v625_v7 = vadd.f32 %v624_v45, %v605_v51  ;;  %v681_v20 = vmul.f32 %v679_v47, %v1216_v10  ;;  %v547_v46 = vrot.slane %v545_v11, 3  ;;  %v445_v48 = vlaneseq }
  0xd4   : > { %v530_v21 = vadd.f32 %v528_v12, %v513_v9  ;;  %v674_v23 = vrot.slane %v672_v17, 2 }
  0xd5   : > { %v634_v13 = vadd.f32 %v632_v5, %v625_v7  ;;  %v683_v26 = vrot.slane %v681_v20, 3  ;;  %v446_v14 = vshrl.u32 %v445_v48, 7 }
  0xd6   : > { %v549_v27 = vadd.f32 %v547_v46, %v530_v21 }
  0xd7   : > { %v645_v18 = vadd.f32 %v643_v8, %v634_v13  ;;  %v447_v49 = vsub.s32 0, %v446_v14  ;;  %vm702_vm5 = vcmp.eq.s32.totalorder %v446_v14, 0  ;;  %vm705_vm6 = vcmp.eq.s32.totalorder %v446_v14, 1 }
  0xd9   : > { %v656_v22 = vadd.f32 %v654_v16, %v645_v18  ;;  %v448_v50 = vrot.slane %v276_v31, %v447_v49 }
  0xdb   : > { %v665_v25 = vadd.f32 %v663_v19, %v656_v22 }
  0xdd   : > { %v676_v28 = vadd.f32 %v674_v23, %v665_v25 }
  0xdf   : > { %v685_v29 = vadd.f32 %v683_v26, %v676_v28 }
  0xe1   : > { %v686_v32 = vadd.f32 %v685_v29, %v549_v27 }
  0xe3   : > { %v687_v34 = vmul.f32 %v686_v32, %v276_v31 }
  0xe5   : > { %v689_v37 = vsel %vm688_vm4, %v687_v34, 0.0 }
  0xe6   : > { %690 = vadd.xlane.f32.xlu1 %v689_v37 }
  0xfb   : > { %v362_v30 = vpop.f32.mrf.mxu0 }
  0xfc   : > { %v363_v10 = vadd.f32 %v362_v30, %v1156_v15 }
  0xfd   : > { %v436_v38 = vpop.f32.mrf.mxu1  ;;  %v818_v39 = vpop.f32.mrf.mxu0 }
  0xfe   : > { %v441_v40 = vmul.f32 0.5, %v436_v38  ;;  %v440_v54 = vmul.f32 %v363_v10, %v275_v52 }
  0xff   : > { %v825_v41 = vpop.f32.mrf.mxu1 }
 0x100   : > { %v442_v42 = vadd.f32 %v441_v40, %v363_v10 }
 0x102   : > { %v443_v44 = vmul.f32 1.442695, %v442_v42 }
 0x104   : > { %884 = vpow2.f32 %v443_v44 }
 0x111   : > { %v885_v53 = vpop.eup %884 }
 0x112   : > { %v449_v55 = vmul.f32 %v885_v53, %v448_v50 }
 0x114   : > { %v450_v56 = vsub.f32 %v440_v54, %v449_v55 }
 0x116   : > { %v451_v57 = vsel %vm292_vm1, %v450_v56, 0.0 }
 0x117   : > { %452 = vadd.xlane.f32.xlu0 %v451_v57 }
 0x16f   : > { %v691_v58 = vpop.xlane.xlu1 %690 }
 0x170   : > { %v692_v15 = vrot.slane %v691_v58, 4 }
 0x172   : > { %v693_v35 = vadd.f32 %v692_v15, %v691_v58 }
 0x174   : > { %v694_v59 = vrot.slane %v693_v35, 2 }
 0x176   : > { %v695_v51 = vadd.f32 %v694_v59, %v693_v35 }
 0x178   : > { %v696_v36 = vrot.slane %v695_v51, 1 }
 0x17a   : > { %v697_v1 = vadd.f32 %v696_v36, %v695_v51 }
 0x1a0   : > { %v453_v60 = vpop.xlane.xlu0 %452 }
 0x1a1   : > { %v454_v24 = vrot.slane %v453_v60, 4 }
 0x1a3   : > { %v455_v43 = vadd.f32 %v454_v24, %v453_v60 }
 0x1a5   : > { %v456_v61 = vrot.slane %v455_v43, 2 }
 0x1a7   : > { %v457_v62 = vadd.f32 %v456_v61, %v455_v43 }
 0x1a9   : > { %v458_v63 = vrot.slane %v457_v62, 1 }
 0x1ab   : > { %v459_v0 = vadd.f32 %v458_v63, %v457_v62 }
 0x1ad   : > { %826 = vpush %v459_v0 }
 0x1ae   : > { %828 = vpush %v697_v1 }
 0x1de   : > { %s827_s11 = spop %826 }
 0x1df   : > { %s829_s16 = spop %828  ;;  %v703_v2 = vstv %s827_s11 }
 0x1e0   : > { %s699_s18 = smul.f32 0.5, %s829_s16  ;;  %v704_v4 = vsel %vm702_vm5, %v703_v2, 0.0 }
 0x1e2   : > { %v706_v3 = vstv %s699_s18 }
 0x1e3   : > { %v707_v45 = vsel %vm705_vm6, %v706_v3, 0.0 }
 0x1e4   : > { %v708_v5 = vadd.f32 %v707_v45, %v704_v4 }
 0x1e6   : > { %709 = vst [vmem:[%s268_s19] sm:$0xff] %v708_v5 }
 0x1e7   : > { %927 = shalt.err (!%p924_p9)
}
 0x1e8   : > { %s928_s13 = scalar_lea.hbm %s722_s17, 128  ;;  %s932_s16 = scalar_lea.hbm %s1287_s6, 384 }
 0x1e9   : > { %p929_p0 = scmp.ne.s32.totalorder %s722_s17, %s928_s13  ;;  %p933_p1 = scmp.lt.s32.totalorder %s722_s17, %s1287_s6 }
 0x1ea   : > { %p934_p3 = scmp.lt.s32.totalorder %s932_s16, %s928_s13 }
 0x1eb   : > { %p930_p2 = pnand %p929_p0, %p1297_p11 }
 0x1ec   : > { %p935_p6 = por %p934_p3, %p933_p1 }
 0x1ed   : > { %p931_p13 = pneg %p930_p2 }
 0x1ef   : > { %p936_p10 = pnand %p935_p6, %p931_p13 }
 0x1f1   : > { %939 = shalt.err (!%p936_p10)
}
 0x1f2   : > { %832 = dma.vmem_to_hbm [thread:$0]  (%p1297_p11), %s725_s20, 128, %s722_s17, %s711_s26  }
 0x1f3 PF: > { %p843_p12 = scmp.ge.s32.totalorder %s978_s24, 2  ;;  %s736_s19 = sand.u32 1, %s966_s21  }
 0x1f4   : > { %p1298_p4 = scmp.ne.s32.totalorder %s1293_s10, 0  ;;  %s737_s14 = scalar_lea.sflag [#allocation4], %s736_s19 }
 0x1f6   : > { %p839_p5 = pnand %p843_p12, %p1298_p4 }
 0x1f8   : > { %p840_p7 = pneg %p839_p5 }
 0x1fa   : > { %961 = dma.done.wait (%p840_p7), %s737_s14, 128  }
 0x1fb   : > { %963 = vsyncadd (%p840_p7), %s737_s14, 4294967168  ;;  %p19_p8 = scmp.ge.s32.totalorder %s1048_s27, 5   ;;  %s1299_s21 = smov %s970_s22 }
 0x1fc   : > { %s1300_s22 = smov %s974_s23  ;;  %s1301_s23 = smov %s1060_s30 }
 0x1fd   : > { %s1302_s24 = smov %s1048_s27  ;;  %21 = sbr.rel (!%p19_p8) target bundleno = 5 (0x5), region = 89 }
 0x202   :  { %742 = vsyncpa [#allocation3], 1 }
 0x203   :  { %744 = vsyncpa [#allocation3 + $0x1], 1 }
 0x204   :  { %745 = vsyncpa [#allocation4], 1 }
 0x205   :  { %747 = vsyncpa [#allocation4 + $0x1], 1 }

</bundles_post_ra>
